<compile_context>
chip_gen: v5e
topology: v5e:2x2
jax: 0.10.0
libtpu: 0.0.40
codegen_flags: <defaults>
</compile_context>

<pallas_src>
import functools
import math

import jax
import jax.numpy as jnp
from jax.experimental import pallas as pl
from jax.experimental.pallas import tpu as pltpu

_LANE_WIDTH = 1024          # last dim of the 2-D slab: 8 * 128 lanes, unmasked vst
_TARGET_BLOCK_ROWS = 256    # 256 x 1024 x 4 B = 1 MiB per block per array


def _layout_for(total_elems: int):
    """Pick a (rows, width, block_rows) lane-dense 2-D layout for `total_elems`."""
    width = _LANE_WIDTH
    rows = -(-total_elems // width)          # ceil div
    rows = -(-rows // 8) * 8                 # round up to sublane multiple (8)
    if rows >= _TARGET_BLOCK_ROWS:
        block_rows = _TARGET_BLOCK_ROWS
        rows = -(-rows // block_rows) * block_rows
    else:
        block_rows = rows                    # single block, full extent
    return rows, width, block_rows


def _reparam_kernel(mean_ref, std_ref, eps_ref, out_ref):
    """out = mean + std * eps (elementwise, one lane-dense tile per grid step)."""
    m = mean_ref[...].astype(jnp.float32)
    s = std_ref[...].astype(jnp.float32)
    e = eps_ref[...]
    out_ref[...] = (m + s * e).astype(out_ref.dtype)


@jax.jit
def gaussian_sampler(mean, std, key):
    """Pallas forward pass of GaussianSampler (reparametrization trick).

    Args:
      mean: (batch_size, *dim) array.
      std:  (batch_size, *dim) array.
      key:  jax.random key providing the Gaussian noise (stands in for
            torch.randn's global RNG state).
    Returns:
      mean + std * eps, eps ~ N(0, I); same shape/dtype as `mean`.
    """
    orig_shape = mean.shape
    n = mean.size
    rows, width, block_rows = _layout_for(n)
    padded = rows * width

    mean2 = jnp.pad(mean.reshape(-1), (0, padded - n)).reshape(rows, width)
    std2 = jnp.pad(std.reshape(-1), (0, padded - n)).reshape(rows, width)
    # TODO(synk): noise drawn host-side via jax.random (in-kernel pltpu.prng_*
    # does not lower in the interpret path used by the checker).
    eps2 = jax.random.normal(key, (rows, width), dtype=jnp.float32)

    grid = (rows // block_rows,)
    block = (block_rows, width)
    spec = pl.BlockSpec(block, lambda i: (i, 0))

    out = pl.pallas_call(
        _reparam_kernel,
        out_shape=jax.ShapeDtypeStruct((rows, width), mean.dtype),
        grid_spec=pltpu.PrefetchScalarGridSpec(
            num_scalar_prefetch=0,
            grid=grid,
            in_specs=[spec, spec, spec],
            out_specs=spec,
        ),
        compiler_params=pltpu.CompilerParams(
            # Every block is independent -> let v7x's 2 TensorCores split it.
            dimension_semantics=("parallel",),
            # 4 arrays x 2 pipeline buffers x 1 MiB = 8 MiB; generous headroom.
            vmem_limit_bytes=32 << 20,
        ),
    )(mean2, std2, eps2)

    return out.reshape(-1)[:n].reshape(orig_shape)


if __name__ == "__main__":
    key = jax.random.PRNGKey(0)
    k_mean, k_std, k_eps = jax.random.split(key, 3)

    # (batch_size, *dim) as in the module docstring; small synthetic shapes.
    batch, c, h, w = 2, 4, 16, 16
    mean = jax.random.normal(k_mean, (batch, c, h, w), dtype=jnp.float32)
    std = jax.nn.softplus(
        jax.random.normal(k_std, (batch, c, h, w), dtype=jnp.float32))

    sample = gaussian_sampler(mean, std, k_eps)
    sample = jax.block_until_ready(sample)

    assert sample.shape == mean.shape
    assert sample.dtype == mean.dtype
    assert bool(jnp.all(jnp.isfinite(sample)))
    # The draw should (almost surely) differ from the mean itself.
    assert bool(jnp.any(jnp.abs(sample - mean) > 0.0))

    # Exact reference check: reproduce the same eps layout in plain JAX.
    n = mean.size
    rows, width, _ = _layout_for(n)
    eps_ref = jax.random.normal(k_eps, (rows, width), dtype=jnp.float32)
    expected = mean + std * eps_ref.reshape(-1)[:n].reshape(mean.shape)
    assert bool(jnp.allclose(sample, expected, rtol=1e-6, atol=1e-6))

    print("KERNEL_OK")
</pallas_src>

<mosaic_0001>
module attributes {stable_mosaic.version = 11 : i64} {
  func.func @_reparam_kernel(%arg0: i32, %arg1: memref<8x1024xf32, #tpu.memory_space<vmem>>, %arg2: memref<8x1024xf32, #tpu.memory_space<vmem>>, %arg3: memref<8x1024xf32, #tpu.memory_space<vmem>>, %arg4: memref<8x1024xf32, #tpu.memory_space<vmem>>) attributes {dimension_semantics = [#tpu.dimension_semantics<parallel>], iteration_bounds = array<i64: 1>, scalar_prefetch = 0 : i64, scratch_operands = 0 : i64, tpu.core_type = #tpu.core_type<tc>, window_params = [{transform_indices = @transform_0, window_bounds = array<i64: 8, 1024>}, {transform_indices = @transform_1, window_bounds = array<i64: 8, 1024>}, {transform_indices = @transform_2, window_bounds = array<i64: 8, 1024>}, {transform_indices = @transform_3, window_bounds = array<i64: 8, 1024>}]} {
    %c0 = arith.constant 0 : index
    %c0_0 = arith.constant 0 : index
    %0 = vector.load %arg1[%c0, %c0_0] : memref<8x1024xf32, #tpu.memory_space<vmem>>, vector<8x1024xf32>
    %c0_1 = arith.constant 0 : index
    %c0_2 = arith.constant 0 : index
    %1 = vector.load %arg2[%c0_1, %c0_2] : memref<8x1024xf32, #tpu.memory_space<vmem>>, vector<8x1024xf32>
    %c0_3 = arith.constant 0 : index
    %c0_4 = arith.constant 0 : index
    %2 = vector.load %arg3[%c0_3, %c0_4] : memref<8x1024xf32, #tpu.memory_space<vmem>>, vector<8x1024xf32>
    %3 = arith.mulf %1, %2 : vector<8x1024xf32>
    %4 = arith.addf %0, %3 : vector<8x1024xf32>
    %c0_5 = arith.constant 0 : index
    %c0_6 = arith.constant 0 : index
    %5 = vector.load %arg4[%c0_5, %c0_6] : memref<8x1024xf32, #tpu.memory_space<vmem>>, vector<8x1024xf32>
    tpu.vector_store %arg4[%c0_5, %c0_6], %4 {strides = array<i32>} : memref<8x1024xf32, #tpu.memory_space<vmem>>, vector<8x1024xf32>,
    return
  }
  func.func @transform_0(%arg0: i32) -> (i32, i32) {
    %c0_i32 = arith.constant 0 : i32
    %c0_i32_0 = arith.constant 0 : i32
    return %arg0, %c0_i32 : i32, i32
  }
  func.func @transform_1(%arg0: i32) -> (i32, i32) {
    %c0_i32 = arith.constant 0 : i32
    %c0_i32_0 = arith.constant 0 : i32
    return %arg0, %c0_i32 : i32, i32
  }
  func.func @transform_2(%arg0: i32) -> (i32, i32) {
    %c0_i32 = arith.constant 0 : i32
    %c0_i32_0 = arith.constant 0 : i32
    return %arg0, %c0_i32 : i32, i32
  }
  func.func @transform_3(%arg0: i32) -> (i32, i32) {
    %c0_i32 = arith.constant 0 : i32
    %c0_i32_0 = arith.constant 0 : i32
    return %arg0, %c0_i32 : i32, i32
  }
}

</mosaic_0001>

<bundles_post_ra>
// kernel: gaussian_sampler.1
= control target key start
LH: loop header
LB: loop body
LE: loop exit
PB: predicated region body
PF: predicated region fallthrough
CT: control target
= control target key end

     0   :  { %s182_s0 = inlined_call_operand.vmem [shape: f32[8,1024], index: 0, kind: input, shape index: {}]   ;;  %s183_s1 = inlined_call_operand.vmem [shape: f32[8,1024], index: 1, kind: input, shape index: {}]   ;;  %s184_s2 = inlined_call_operand.vmem [shape: f32[8,1024], index: 2, kind: input, shape index: {}]   ;;  %s185_s3 = inlined_call_operand.vmem [shape: f32[8,1024], index: 3, kind: output, shape index: {}]  }
   0x1   :  { %v14_v0 = vld [vmem:[%s182_s0] sm:$0xff]  ;;  %v15_v4 = vld [vmem:[%s182_s0 + $0x8] sm:$0xff]  ;;  %v16_v8 = vld [vmem:[%s182_s0 + $0x10] sm:$0xff] }
   0x2   :  { %v22_v1 = vld [vmem:[%s183_s1] sm:$0xff]  ;;  %v23_v5 = vld [vmem:[%s183_s1 + $0x8] sm:$0xff]  ;;  %v24_v9 = vld [vmem:[%s183_s1 + $0x10] sm:$0xff] }
   0x3   :  { %v30_v2 = vld [vmem:[%s184_s2] sm:$0xff]  ;;  %v31_v6 = vld [vmem:[%s184_s2 + $0x8] sm:$0xff]  ;;  %v32_v10 = vld [vmem:[%s184_s2 + $0x10] sm:$0xff] }
   0x4   :  { %v38_v3 = vmul.f32 %v30_v2, %v22_v1  ;;  %v39_v7 = vmul.f32 %v31_v6, %v23_v5  ;;  %v40_v12 = vmul.f32 %v32_v10, %v24_v9  ;;  %v17_v13 = vld [vmem:[%s182_s0 + $0x18] sm:$0xff]  ;;  %v18_v18 = vld [vmem:[%s182_s0 + $0x20] sm:$0xff]  ;;  %v19_v23 = vld [vmem:[%s182_s0 + $0x28] sm:$0xff] }
   0x5   :  { %v25_v14 = vld [vmem:[%s183_s1 + $0x18] sm:$0xff]  ;;  %v26_v19 = vld [vmem:[%s183_s1 + $0x20] sm:$0xff]  ;;  %v27_v24 = vld [vmem:[%s183_s1 + $0x28] sm:$0xff] }
   0x6   :  { %v46_v11 = vadd.f32 %v38_v3, %v14_v0  ;;  %v33_v15 = vld [vmem:[%s184_s2 + $0x18] sm:$0xff]  ;;  %v47_v16 = vadd.f32 %v39_v7, %v15_v4  ;;  %v34_v20 = vld [vmem:[%s184_s2 + $0x20] sm:$0xff]  ;;  %v48_v21 = vadd.f32 %v40_v12, %v16_v8  ;;  %v35_v25 = vld [vmem:[%s184_s2 + $0x28] sm:$0xff] }
   0x7   :  { %v41_v17 = vmul.f32 %v33_v15, %v25_v14  ;;  %v42_v22 = vmul.f32 %v34_v20, %v26_v19  ;;  %v43_v27 = vmul.f32 %v35_v25, %v27_v24  ;;  %v20_v28 = vld [vmem:[%s182_s0 + $0x30] sm:$0xff]  ;;  %v21_v33 = vld [vmem:[%s182_s0 + $0x38] sm:$0xff] }
   0x8   :  { %54 = vst [vmem:[%s185_s3] sm:$0xff] %v46_v11  ;;  %v28_v29 = vld [vmem:[%s183_s1 + $0x30] sm:$0xff]  ;;  %v29_v34 = vld [vmem:[%s183_s1 + $0x38] sm:$0xff] }
   0x9   :  { %55 = vst [vmem:[%s185_s3 + $0x8] sm:$0xff] %v47_v16  ;;  %v49_v26 = vadd.f32 %v41_v17, %v17_v13  ;;  %v36_v30 = vld [vmem:[%s184_s2 + $0x30] sm:$0xff]  ;;  %v50_v31 = vadd.f32 %v42_v22, %v18_v18  ;;  %v37_v35 = vld [vmem:[%s184_s2 + $0x38] sm:$0xff]  ;;  %v51_v36 = vadd.f32 %v43_v27, %v19_v23 }
   0xa   :  { %56 = vst [vmem:[%s185_s3 + $0x10] sm:$0xff] %v48_v21  ;;  %v44_v32 = vmul.f32 %v36_v30, %v28_v29  ;;  %v45_v37 = vmul.f32 %v37_v35, %v29_v34 }
   0xb   :  { %57 = vst [vmem:[%s185_s3 + $0x18] sm:$0xff] %v49_v26 }
   0xc   :  { %58 = vst [vmem:[%s185_s3 + $0x20] sm:$0xff] %v50_v31  ;;  %v52_v38 = vadd.f32 %v44_v32, %v20_v28  ;;  %v53_v39 = vadd.f32 %v45_v37, %v21_v33 }
   0xd   :  { %59 = vst [vmem:[%s185_s3 + $0x28] sm:$0xff] %v51_v36 }
   0xe   :  { %60 = vst [vmem:[%s185_s3 + $0x30] sm:$0xff] %v52_v38 }
   0xf   :  { %61 = vst [vmem:[%s185_s3 + $0x38] sm:$0xff] %v53_v39 }

</bundles_post_ra>
